<compile_context>
chip_gen: v7x
topology: tpu7x:2x2x1
jax: 0.10.0
libtpu: 0.0.40
codegen_flags: <defaults>
</compile_context>

<pallas_src>
import functools

import jax
import jax.numpy as jnp
from jax.experimental import pallas as pl
from jax.experimental.pallas import tpu as pltpu


_MIB = 1 << 20


def _vmem_capacity_bytes():
    """Physical VMEM per core; conservative 64 MiB (v7x-sized) fallback."""
    try:
        info = pltpu.get_tpu_info()
        cap = int(getattr(info, "vmem_capacity_bytes", 0))
        if cap > 0:
            return cap
    except Exception:
        pass
    return 64 * _MIB


def _sublane_align(itemsize):
    if itemsize >= 4:
        return 8
    if itemsize == 2:
        return 16
    return 32


def _choose_tile_rows(rows, width, itemsize, vmem_cap):
    """Row tile: sublane-aligned, sized from a generation-aware VMEM budget."""
    align = _sublane_align(itemsize)
    big_vmem = vmem_cap >= 100 * _MIB          # v5e / v6e: 128 MiB physical VMEM

    # Per-tile footprint per row (bytes):
    #   2x input block + 2x output block (double-buffered) + ~2 f32 temp blocks.
    per_row = max(width * (4 * itemsize + 8), 1)
    budget = (72 * _MIB) if big_vmem else (36 * _MIB)
    tm = max(align, budget // per_row)
    tm = (tm // align) * align

    rows_cap = ((rows + align - 1) // align) * align
    tm = max(align, min(tm, rows_cap))

    # v7x shards the (parallel) row grid across 2 TensorCores: keep the step
    # count even so both cores get equal work. No effect on v5e/v6e (1 TC).
    two_core = not big_vmem
    if two_core and rows > align:
        steps = pl.cdiv(rows, tm)
        if steps == 1:
            steps = 2
        if steps % 2 == 1:
            steps += 1
        tm_bal = -(-rows // steps)                      # ceil(rows / steps)
        tm_bal = ((tm_bal + align - 1) // align) * align
        tm = max(align, min(tm, tm_bal))
    return tm


def _vmem_limit_bytes(tm, width, itemsize, vmem_cap):
    """Accurate scoped-VMEM request: double-buffered blocks + f32 temps + slack."""
    big_vmem = vmem_cap >= 100 * _MIB
    need = tm * width * (4 * itemsize + 8) + 4 * width * 4 + 2 * _MIB
    cap = (96 * _MIB) if big_vmem else (48 * _MIB)
    return int(min(max(need, 32 * _MIB), cap))


def _layernorm_kernel(x_ref, p_ref, o_ref, *, eps, feat):
    """Plain path: one (padded) row of features per kernel row."""
    x = x_ref[...]
    inv_n = jnp.float32(1.0 / feat)
    inv_nm1 = jnp.float32(1.0 / max(feat - 1, 1))

    # One-pass statistics: single sweep of x, two cross-lane reductions.
    xf = x.astype(jnp.float32)
    s = jnp.sum(xf, axis=-1, keepdims=True)
    ss = jnp.sum(xf * xf, axis=-1, keepdims=True)
    mean = s * inv_n
    var = jnp.maximum((ss - s * mean) * inv_nm1, 0.0)      # unbiased (ddof=1)
    inv = pl.reciprocal(jnp.sqrt(var) + jnp.float32(eps), approx=False)

    a = p_ref[0:1, :]
    b = p_ref[1:2, :]
    # Recompute (x - mean) here (vreg-at-a-time) instead of reusing a centered
    # full-block temp from the reduction phase.
    o_ref[...] = (a * ((x.astype(jnp.float32) - mean) * inv) + b).astype(o_ref.dtype)


def _layernorm_packed_kernel(x_ref, p_ref, seg_ref, segt_ref, o_ref, *, eps, feat):
    """Packed path for feat < 128: k = width//feat rows per 128-lane slab.

    x_ref:   (tm, width)    width == k*feat == 128, lane-dense
    p_ref:   (2, width)     scale/bias tiled k times
    seg_ref: (width, width) seg[j, s]  = 1 iff j // feat == s  (cols >= k zero)
    segt_ref:(width, width) transpose of seg
    """
    x = x_ref[...]
    seg = seg_ref[...]
    segt = segt_ref[...]
    inv_n = jnp.float32(1.0 / feat)
    inv_nm1 = jnp.float32(1.0 / max(feat - 1, 1))
    hp = jax.lax.Precision.HIGHEST      # keep full f32 accuracy through the MXU

    xf = x.astype(jnp.float32)
    # Segmented row sums on the (idle) MXU: (tm, W) @ (W, W) -> (tm, W);
    # column s holds sum over original row-segment s (columns >= k are zero).
    s = jnp.dot(xf, seg, preferred_element_type=jnp.float32, precision=hp)
    ss = jnp.dot(xf * xf, seg, preferred_element_type=jnp.float32, precision=hp)
    mean = s * inv_n
    var = jnp.maximum((ss - s * mean) * inv_nm1, 0.0)       # unbiased (ddof=1)
    inv = pl.reciprocal(jnp.sqrt(var) + jnp.float32(eps), approx=False)

    # Broadcast per-segment stats back to their lane positions (rows >= k of
    # segt are zero, so the garbage columns of mean/inv never contribute).
    mean_b = jnp.dot(mean, segt, preferred_element_type=jnp.float32, precision=hp)
    inv_b = jnp.dot(inv, segt, preferred_element_type=jnp.float32, precision=hp)

    a = p_ref[0:1, :]
    b = p_ref[1:2, :]
    o_ref[...] = (a * ((x.astype(jnp.float32) - mean_b) * inv_b) + b).astype(o_ref.dtype)


def layer_norm(x, a_2, b_2, eps=1e-6, *, tile_rows=None):
    """LayerNorm over the last axis of x. x: (..., feat); a_2, b_2: (feat,)."""
    orig_shape = x.shape
    feat = int(orig_shape[-1])
    rows = 1
    for d in orig_shape[:-1]:
        rows *= int(d)

    itemsize = jnp.dtype(x.dtype).itemsize
    vmem_cap = _vmem_capacity_bytes()

    a_f32 = a_2.astype(jnp.float32).reshape(feat)
    b_f32 = b_2.astype(jnp.float32).reshape(feat)

    # Lane-dense packing for narrow feature dims (feat < 128, feat | 128):
    # pack k consecutive rows per 128-lane slab so stores are unmasked vst.
    k = 1
    if feat < 128 and 128 % feat == 0:
        k_cand = 128 // feat
        if rows % k_cand == 0 and rows >= k_cand:
            k = k_cand

    if k > 1:
        width = k * feat                      # == 128
        rows_p = rows // k
        x2 = x.reshape(rows_p, width)         # contiguous reshape, zero-cost
        params = jnp.stack([jnp.tile(a_f32, k), jnp.tile(b_f32, k)], axis=0)
        lane_seg = jnp.arange(width, dtype=jnp.int32) // feat
        cols = jnp.arange(width, dtype=jnp.int32)
        seg = (lane_seg[:, None] == cols[None, :]).astype(jnp.float32)  # (W, W)
        segt = seg.T
    else:
        width = feat
        rows_p = rows
        x2 = x.reshape(rows_p, width)
        params = jnp.stack([a_f32, b_f32], axis=0)
        seg = segt = None

    if tile_rows is not None:
        tm = int(tile_rows)
    else:
        tm = _choose_tile_rows(rows_p, width, itemsize, vmem_cap)
    grid = (pl.cdiv(rows_p, tm),)
    vmem_limit = _vmem_limit_bytes(tm, width, itemsize, vmem_cap)

    x_spec = pl.BlockSpec((tm, width), lambda i: (i, 0))
    p_spec = pl.BlockSpec((2, width), lambda i: (0, 0))
    o_spec = pl.BlockSpec((tm, width), lambda i: (i, 0))

    if k > 1:
        kernel = functools.partial(_layernorm_packed_kernel, eps=float(eps), feat=feat)
        in_specs = [
            x_spec,
            p_spec,
            pl.BlockSpec((width, width), lambda i: (0, 0)),
            pl.BlockSpec((width, width), lambda i: (0, 0)),
        ]
        operands = (x2, params, seg, segt)
    else:
        kernel = functools.partial(_layernorm_kernel, eps=float(eps), feat=feat)
        in_specs = [x_spec, p_spec]
        operands = (x2, params)

    out = pl.pallas_call(
        kernel,
        out_shape=jax.ShapeDtypeStruct((rows_p, width), x.dtype),
        grid_spec=pltpu.PrefetchScalarGridSpec(
            num_scalar_prefetch=0,
            grid=grid,
            in_specs=in_specs,
            out_specs=o_spec,
        ),
        compiler_params=pltpu.CompilerParams(
            dimension_semantics=("parallel",),
            vmem_limit_bytes=vmem_limit,
        ),
    )(*operands)

    return out.reshape(orig_shape)


def _reference_layer_norm(x, a_2, b_2, eps=1e-6):
    x32 = x.astype(jnp.float32)
    mean = jnp.mean(x32, axis=-1, keepdims=True)
    std = jnp.std(x32, axis=-1, keepdims=True, ddof=1)   # unbiased, like torch.std
    return (a_2 * (x32 - mean) / (std + eps) + b_2).astype(x.dtype)


if __name__ == "__main__":
    batch, seq, hidden = 2, 8, 32
    key = jax.random.PRNGKey(0)
    x = jax.random.normal(key, (batch, seq, hidden), dtype=jnp.float32)

    # Matches nn.Parameter(torch.ones(features)) / torch.zeros(features)
    a_2 = jnp.ones((hidden,), dtype=jnp.float32)
    b_2 = jnp.zeros((hidden,), dtype=jnp.float32)

    out = layer_norm(x, a_2, b_2, eps=1e-6)
    out = jax.block_until_ready(out)

    ref = _reference_layer_norm(x, a_2, b_2, eps=1e-6)
    assert out.shape == x.shape
    assert jnp.allclose(out, ref, atol=1e-5, rtol=1e-5), "mismatch vs reference"

    print("KERNEL_OK")
</pallas_src>

<mosaic_0001>
module attributes {stable_mosaic.version = 11 : i64} {
  func.func @_layernorm_packed_kernel(%arg0: i32, %arg1: memref<8x128xf32, #tpu.memory_space<vmem>>, %arg2: memref<2x128xf32, #tpu.memory_space<vmem>>, %arg3: memref<128x128xf32, #tpu.memory_space<vmem>>, %arg4: memref<128x128xf32, #tpu.memory_space<vmem>>, %arg5: memref<8x128xf32, #tpu.memory_space<vmem>>) attributes {dimension_semantics = [#tpu.dimension_semantics<parallel>], iteration_bounds = array<i64: 1>, scalar_prefetch = 0 : i64, scratch_operands = 0 : i64, tpu.core_type = #tpu.core_type<tc>, window_params = [{transform_indices = @transform_0, window_bounds = array<i64: 8, 128>}, {pipeline_mode = #tpu.pipeline_mode<synchronous>, transform_indices = @transform_1, window_bounds = array<i64: 2, 128>}, {pipeline_mode = #tpu.pipeline_mode<synchronous>, transform_indices = @transform_2, window_bounds = array<i64: 128, 128>}, {pipeline_mode = #tpu.pipeline_mode<synchronous>, transform_indices = @transform_3, window_bounds = array<i64: 128, 128>}, {transform_indices = @transform_4, window_bounds = array<i64: 8, 128>}]} {
    %c0 = arith.constant 0 : index
    %c0_0 = arith.constant 0 : index
    %0 = vector.load %arg1[%c0, %c0_0] : memref<8x128xf32, #tpu.memory_space<vmem>>, vector<8x128xf32>
    %c0_1 = arith.constant 0 : index
    %c0_2 = arith.constant 0 : index
    %1 = vector.load %arg3[%c0_1, %c0_2] : memref<128x128xf32, #tpu.memory_space<vmem>>, vector<128x128xf32>
    %c0_3 = arith.constant 0 : index
    %c0_4 = arith.constant 0 : index
    %2 = vector.load %arg4[%c0_3, %c0_4] : memref<128x128xf32, #tpu.memory_space<vmem>>, vector<128x128xf32>
    %cst = arith.constant dense<0.000000e+00> : vector<8x128xf32>
    %3 = tpu.matmul %0, %1, %cst {dimension_numbers = #tpu.dot_dimension_numbers<[1], [0], [0], [1], [0, 0, 1, 1], [], []>, precision = #tpu.contract_precision<fp32>} : vector<8x128xf32>, vector<128x128xf32>, vector<8x128xf32> -> vector<8x128xf32>
    %4 = arith.mulf %0, %0 : vector<8x128xf32>
    %cst_5 = arith.constant dense<0.000000e+00> : vector<8x128xf32>
    %5 = tpu.matmul %4, %1, %cst_5 {dimension_numbers = #tpu.dot_dimension_numbers<[1], [0], [0], [1], [0, 0, 1, 1], [], []>, precision = #tpu.contract_precision<fp32>} : vector<8x128xf32>, vector<128x128xf32>, vector<8x128xf32> -> vector<8x128xf32>
    %cst_6 = arith.constant 3.125000e-02 : f32
    %6 = vector.broadcast %cst_6 : f32 to vector<8x128xf32>
    %7 = arith.mulf %3, %6 : vector<8x128xf32>
    %8 = arith.mulf %3, %7 : vector<8x128xf32>
    %9 = arith.subf %5, %8 : vector<8x128xf32>
    %cst_7 = arith.constant 0.0322580636 : f32
    %10 = vector.broadcast %cst_7 : f32 to vector<8x128xf32>
    %11 = arith.mulf %9, %10 : vector<8x128xf32>
    %cst_8 = arith.constant 0.000000e+00 : f32
    %12 = vector.broadcast %cst_8 : f32 to vector<8x128xf32>
    %13 = arith.maximumf %11, %12 : vector<8x128xf32>
    %14 = math.sqrt %13 : vector<8x128xf32>
    %cst_9 = arith.constant 9.99999997E-7 : f32
    %15 = vector.broadcast %cst_9 : f32 to vector<8x128xf32>
    %16 = arith.addf %14, %15 : vector<8x128xf32>
    %17 = tpu.reciprocal %16 : vector<8x128xf32> -> vector<8x128xf32>
    %cst_10 = arith.constant dense<0.000000e+00> : vector<8x128xf32>
    %18 = tpu.matmul %7, %2, %cst_10 {dimension_numbers = #tpu.dot_dimension_numbers<[1], [0], [0], [1], [0, 0, 1, 1], [], []>, precision = #tpu.contract_precision<fp32>} : vector<8x128xf32>, vector<128x128xf32>, vector<8x128xf32> -> vector<8x128xf32>
    %cst_11 = arith.constant dense<0.000000e+00> : vector<8x128xf32>
    %19 = tpu.matmul %17, %2, %cst_11 {dimension_numbers = #tpu.dot_dimension_numbers<[1], [0], [0], [1], [0, 0, 1, 1], [], []>, precision = #tpu.contract_precision<fp32>} : vector<8x128xf32>, vector<128x128xf32>, vector<8x128xf32> -> vector<8x128xf32>
    %c0_12 = arith.constant 0 : index
    %c0_13 = arith.constant 0 : index
    %20 = vector.load %arg2[%c0_12, %c0_13] : memref<2x128xf32, #tpu.memory_space<vmem>>, vector<1x128xf32>
    %c1 = arith.constant 1 : index
    %c0_14 = arith.constant 0 : index
    %21 = vector.load %arg2[%c1, %c0_14] : memref<2x128xf32, #tpu.memory_space<vmem>>, vector<1x128xf32>
    %22 = arith.subf %0, %18 : vector<8x128xf32>
    %23 = arith.mulf %22, %19 : vector<8x128xf32>
    %24 = vector.broadcast %20 : vector<1x128xf32> to vector<8x128xf32>
    %25 = arith.mulf %24, %23 : vector<8x128xf32>
    %26 = vector.broadcast %21 : vector<1x128xf32> to vector<8x128xf32>
    %27 = arith.addf %25, %26 : vector<8x128xf32>
    %c0_15 = arith.constant 0 : index
    %c0_16 = arith.constant 0 : index
    %28 = vector.load %arg5[%c0_15, %c0_16] : memref<8x128xf32, #tpu.memory_space<vmem>>, vector<8x128xf32>
    tpu.vector_store %arg5[%c0_15, %c0_16], %27 {strides = array<i32>} : memref<8x128xf32, #tpu.memory_space<vmem>>, vector<8x128xf32>,
    return
  }
  func.func @transform_0(%arg0: i32) -> (i32, i32) {
    %c0_i32 = arith.constant 0 : i32
    %c0_i32_0 = arith.constant 0 : i32
    return %arg0, %c0_i32 : i32, i32
  }
  func.func @transform_1(%arg0: i32) -> (i32, i32) {
    %c0_i32 = arith.constant 0 : i32
    %c0_i32_0 = arith.constant 0 : i32
    %c0_i32_1 = arith.constant 0 : i32
    return %c0_i32, %c0_i32_0 : i32, i32
  }
  func.func @transform_2(%arg0: i32) -> (i32, i32) {
    %c0_i32 = arith.constant 0 : i32
    %c0_i32_0 = arith.constant 0 : i32
    %c0_i32_1 = arith.constant 0 : i32
    return %c0_i32, %c0_i32_0 : i32, i32
  }
  func.func @transform_3(%arg0: i32) -> (i32, i32) {
    %c0_i32 = arith.constant 0 : i32
    %c0_i32_0 = arith.constant 0 : i32
    %c0_i32_1 = arith.constant 0 : i32
    return %c0_i32, %c0_i32_0 : i32, i32
  }
  func.func @transform_4(%arg0: i32) -> (i32, i32) {
    %c0_i32 = arith.constant 0 : i32
    %c0_i32_0 = arith.constant 0 : i32
    return %arg0, %c0_i32 : i32, i32
  }
}

</mosaic_0001>

<bundles_post_ra>
// kernel: tpu_custom_call.1
= control target key start
LH: loop header
LB: loop body
LE: loop exit
PB: predicated region body
PF: predicated region fallthrough
CT: control target
= control target key end

     0   :  { %9 = vsyncpa [#allocation3], 0  ;;  %s5601_s0 = inlined_call_operand.hbm [shape: f32[4,128], index: 0, kind: input, shape index: {}]   ;;  %s5602_s1 = inlined_call_operand.vmem [shape: f32[2,128], index: 1, kind: input, shape index: {}]   ;;  %s5603_s2 = inlined_call_operand.hbm [shape: f32[128,128], index: 2, kind: input, shape index: {}]   ;;  %s5604_s3 = inlined_call_operand.hbm [shape: f32[128,128], index: 3, kind: input, shape index: {}]   ;;  %s5605_s4 = inlined_call_operand.hbm [shape: f32[4,128], index: 4, kind: output, shape index: {}]  }
   0x1   :  { %10 = vsyncpa [#allocation6], 0 }
   0x2   :  { %11 = vsyncpa [#allocation4], 0 }
   0x3   :  { %16 = vsyncadd [#allocation3], 64  ;;  %s4680_s15 = smov [#allocation5]   ;;  %s4586_s19 = scalar_lea.hbm %s5603_s2, 2048 }
   0x4   :  { %s31_s16 = sshll.u32 %s4680_s15, 4  ;;  %p4587_p0 = scmp.ne.s32.totalorder %s5603_s2, %s4586_s19  ;;  %s32_s16 = int_to_ptr.vmem [resolvable:$true] %s31_s16 }
   0x5   :  { %p4590_p1 = scmp.lt.u32.totalorder %s4586_s19, %s5603_s2 }
   0x7   :  { %p4592_p2 = pnand %p4590_p1, %p4587_p0 }
   0x9   :  { %4595 = shalt.err (!%p4592_p2)
}
   0xa   :  { %s4596_s24 = scalar_lea.vmem %s32_s16, 2048  ;;  %p4601_p4 = scmp.lt.s32.totalorder %s32_s16, %s32_s16 }
   0xb   :  { %p4597_p3 = scmp.ne.s32.totalorder %s32_s16, %s4596_s24  ;;  %p4602_p5 = scmp.lt.s32.totalorder %s4596_s24, %s4596_s24 }
   0xd   :  { %p4603_p6 = por %p4602_p5, %p4601_p4 }
   0xf   :  { %p4604_p7 = pnand %p4603_p6, %p4597_p3 }
  0x11   :  { %4607 = shalt.err (!%p4604_p7)
}
  0x12   :  { %s4681_s25 = smov 128   ;;  %s4682_s26 = smov 8  }
  0x13   :  { %37 = dma.hbm_to_vmem [thread:$0]  %s5603_s2, 2048, %s32_s16, [#allocation6], %s4681_s25, %s4681_s25, %s4682_s26  }
  0x14   :  { %s4683_s29 = smov [#allocation2]   ;;  %s4608_s7 = scalar_lea.hbm %s5601_s0, 64 }
  0x15   :  { %s17_s30 = sshll.u32 %s4683_s29, 4  ;;  %p4609_p8 = scmp.ne.s32.totalorder %s5601_s0, %s4608_s7  ;;  %s18_s30 = int_to_ptr.vmem [resolvable:$true] %s17_s30 }
  0x16   :  { %p4612_p9 = scmp.lt.u32.totalorder %s4608_s7, %s5601_s0 }
  0x18   :  { %p4614_p10 = pnand %p4612_p9, %p4609_p8 }
  0x1a   :  { %4617 = shalt.err (!%p4614_p10)
}
  0x1b   :  { %s4618_s12 = scalar_lea.vmem %s18_s30, 64  ;;  %s4622_s2 = scalar_lea.vmem %s18_s30, 128 }
  0x1c   :  { %p4619_p11 = scmp.ne.s32.totalorder %s18_s30, %s4618_s12  ;;  %p4623_p12 = scmp.lt.s32.totalorder %s18_s30, %s18_s30 }
  0x1d   :  { %p4624_p13 = scmp.lt.s32.totalorder %s4622_s2, %s4618_s12 }
  0x1f   :  { %p4625_p0 = por %p4624_p13, %p4623_p12 }
  0x21   :  { %p4626_p1 = pnand %p4625_p0, %p4619_p11 }
  0x23   :  { %4629 = shalt.err (!%p4626_p1)
}
  0x24   :  { %s4684_s13 = smov 64   ;;  %s4685_s14 = smov 4  }
  0x25   :  { %23 = dma.hbm_to_vmem [thread:$0]  %s5601_s0, 64, %s18_s30, [#allocation3], %s4684_s13, %s4684_s13, %s4685_s14  }
  0x26   :  { %s4686_s17 = smov [#allocation7]   ;;  %s4630_s21 = scalar_lea.hbm %s5604_s3, 2048 }
  0x27   :  { %s43_s18 = sshll.u32 %s4686_s17, 4  ;;  %p4631_p2 = scmp.ne.s32.totalorder %s5604_s3, %s4630_s21  ;;  %s44_s18 = int_to_ptr.vmem [resolvable:$true] %s43_s18 }
  0x28   :  { %p4634_p3 = scmp.lt.u32.totalorder %s4630_s21, %s5604_s3 }
  0x2a   :  { %p4636_p4 = pnand %p4634_p3, %p4631_p2 }
  0x2c   :  { %4639 = shalt.err (!%p4636_p4)
}
  0x2d   :  { %s4640_s28 = scalar_lea.vmem %s44_s18, 2048  ;;  %p4645_p6 = scmp.lt.s32.totalorder %s44_s18, %s44_s18 }
  0x2e   :  { %p4641_p5 = scmp.ne.s32.totalorder %s44_s18, %s4640_s28  ;;  %p4646_p7 = scmp.lt.s32.totalorder %s4640_s28, %s4640_s28 }
  0x30   :  { %p4647_p8 = por %p4646_p7, %p4645_p6 }
  0x32   :  { %p4648_p9 = pnand %p4647_p8, %p4641_p5 }
  0x34   :  { %4651 = shalt.err (!%p4648_p9)
}
  0x35   :  { %49 = dma.hbm_to_vmem [thread:$0]  %s5604_s3, 2048, %s44_s18, [#allocation6], %s4681_s25, %s4681_s25, %s4682_s26  }
  0x36   :  { %4674 = dma.done.wait [#allocation3], 128  }
  0x37   :  { %4675 = vsyncadd [#allocation3], 4294967168 }
  0x38   :  { %4676 = dma.done.wait [#allocation6], 4096  }
  0x39   :  { %4677 = vsyncadd [#allocation6], 4294963200  ;;  %v4687_v0 = vmov 0.0|0.0   ;;  %vm4688_vm0 = vmmov 0   ;;  %v4689_v1 = vmov 0.0   ;;  %v60_v2 = vld [vmem:[#allocation5] sm:$0xff] }
  0x3a   :  { %3954 = vmatprep.subr.bf16.mxu0 %v4687_v0  ;;  %4098 = vmatprep.subr.bf16.mxu1 %v4687_v0  ;;  %v61_v3 = vld [vmem:[#allocation5 + $0x8] sm:$0xff]  ;;  %v62_v4 = vld [vmem:[#allocation5 + $0x10] sm:$0xff]  ;;  %v93_v5 = vand.u32 4294901760, %v60_v2  ;;  %v63_v7 = vld [vmem:[#allocation5 + $0x18] sm:$0xff] }
  0x3b   :  { %3146 = vmatprep.mubr.msk.f32.mxu0 %vm4688_vm0, %v4689_v1  ;;  %3356 = vmatprep.mubr.msk.f32.mxu1 %vm4688_vm0, %v4689_v1  ;;  %v96_v6 = vand.u32 4294901760, %v61_v3  ;;  %v99_v8 = vand.u32 4294901760, %v62_v4  ;;  %v102_v9 = vand.u32 4294901760, %v63_v7  ;;  %v4767_v10 = vld [vmem:[#allocation5 + $0x20] sm:$0xff]  ;;  %v4769_v11 = vld [vmem:[#allocation5 + $0x28] sm:$0xff]  ;;  %v4781_v16 = vld [vmem:[#allocation5 + $0x30] sm:$0xff] }
  0x3c   :  { %v105_v14 = vand.u32 4294901760, %v4767_v10  ;;  %v108_v15 = vand.u32 4294901760, %v4769_v11  ;;  %v4783_v17 = vld [vmem:[#allocation5 + $0x38] sm:$0xff]  ;;  %v111_v20 = vand.u32 4294901760, %v4781_v16  ;;  %v68_v22 = vld [vmem:[#allocation5 + $0x40] sm:$0xff]  ;;  %v69_v23 = vld [vmem:[#allocation5 + $0x48] sm:$0xff]  ;;  %v4799_v35 = vsub.f32 %v60_v2, %v93_v5 }
  0x3d   :  { %v4771_v12 = vpack.c.bf16 %v96_v6, %v93_v5  ;;  %v4775_v13 = vpack.c.bf16 %v102_v9, %v99_v8  ;;  %v59_v18 = vld [vmem:[#allocation2] sm:$0xff]  ;;  %v114_v21 = vand.u32 4294901760, %v4783_v17  ;;  %v70_v26 = vld [vmem:[#allocation5 + $0x50] sm:$0xff]  ;;  %v72_v28 = vld [vmem:[#allocation5 + $0x60] sm:$0xff]  ;;  %v117_v30 = vand.u32 4294901760, %v68_v22 }
  0x3e   :  { %v4787_v19 = vpack.c.bf16 %v108_v15, %v105_v14  ;;  %v4793_v24 = vand.u32 4294901760, %v59_v18  ;;  %v733_v25 = vmul.f32 %v59_v18, %v59_v18  ;;  %v71_v27 = vld [vmem:[#allocation5 + $0x58] sm:$0xff]  ;;  %v120_v31 = vand.u32 4294901760, %v69_v23  ;;  %v73_v32 = vld [vmem:[#allocation5 + $0x68] sm:$0xff]  ;;  %v74_v33 = vld [vmem:[#allocation5 + $0x70] sm:$0xff] }
  0x3f   :  { %3956 = vmatpush3.bf16.msra.mxu0 %v4771_v12  ;;  %4100 = vmatpush3.bf16.msra.mxu1 %v4771_v12  ;;  %v4797_v29 = vpack.c.bf16 %v114_v21, %v111_v20  ;;  %v75_v34 = vld [vmem:[#allocation5 + $0x78] sm:$0xff]  ;;  %v4806_v37 = vsub.f32 %v61_v3, %v96_v6  ;;  %v4808_v38 = vsub.f32 %v62_v4, %v99_v8  ;;  %v123_v39 = vand.u32 4294901760, %v70_v26 }
  0x40   :  { %3957 = vmatprep.subr.bf16.mxu0 %v4687_v0  ;;  %4101 = vmatprep.subr.bf16.mxu1 %v4687_v0  ;;  %v4804_v36 = vsub.f32 %v59_v18, %v4793_v24  ;;  %v126_v40 = vand.u32 4294901760, %v71_v27  ;;  %v4810_v41 = vand.u32 4294901760, %v733_v25  ;;  %v129_v42 = vand.u32 4294901760, %v72_v28 }
  0x41   :  { %v132_v43 = vand.u32 4294901760, %v73_v32  ;;  %v135_v44 = vand.u32 4294901760, %v74_v33  ;;  %v138_v45 = vand.u32 4294901760, %v75_v34  ;;  %v4814_v46 = vpack.c.bf16 %v120_v31, %v117_v30 }
  0x42   :  { %v186_v47 = vand.u32 4294901760, %v4799_v35  ;;  %v5607_v48 = vand.u32 4294901760, %v4804_v36  ;;  %v193_v49 = vand.u32 4294901760, %v4806_v37  ;;  %v200_v50 = vand.u32 4294901760, %v4808_v38 }
  0x43   :  { %3959 = vmatpush3.bf16.msra.mxu0 %v4775_v13  ;;  %4103 = vmatpush3.bf16.msra.mxu1 %v4775_v13  ;;  %v4822_v51 = vsub.f32 %v63_v7, %v102_v9  ;;  %v4825_v52 = vsub.f32 %v733_v25, %v4810_v41  ;;  %v4827_v53 = vpack.c.bf16 %v126_v40, %v123_v39 }
  0x44   :  { %3960 = vmatprep.subr.bf16.mxu0 %v4687_v0  ;;  %4104 = vmatprep.subr.bf16.mxu1 %v4687_v0  ;;  %v4829_v54 = vpack.c.bf16 %v132_v43, %v129_v42  ;;  %v4831_v55 = vpack.c.bf16 %v138_v45, %v135_v44  ;;  %v187_v56 = vsub.f32 %v4799_v35, %v186_v47 }
  0x45   :  { %v4837_v57 = vsub.f32 %v4767_v10, %v105_v14  ;;  %v4840_v58 = vsub.f32 %v4769_v11, %v108_v15  ;;  %v176_v59 = vsub.f32 %v4804_v36, %v5607_v48  ;;  %v194_v60 = vsub.f32 %v4806_v37, %v193_v49 }
  0x46   :  { %v4849_v61 = vsub.f32 %v4808_v38, %v200_v50  ;;  %v207_v62 = vand.u32 4294901760, %v4822_v51  ;;  %v5606_v63 = vand.u32 4294901760, %v4825_v52  ;;  %v4854_v2 = vsub.f32 %v4781_v16, %v111_v20 }
  0x47   :  { %3962 = vmatpush3.bf16.msra.mxu0 %v4787_v19  ;;  %4106 = vmatpush3.bf16.msra.mxu1 %v4787_v19  ;;  %v4857_v3 = vsub.f32 %v4783_v17, %v114_v21  ;;  %v4859_v4 = vsub.f32 %v68_v22, %v117_v30  ;;  %v4861_v5 = vsub.f32 %v69_v23, %v120_v31  ;;  %v214_v9 = vand.u32 4294901760, %v4837_v57 }
  0x48   :  { %3963 = vmatprep.subr.bf16.mxu0 %v4687_v0  ;;  %4107 = vmatprep.subr.bf16.mxu1 %v4687_v0  ;;  %v4863_v6 = vsub.f32 %v70_v26, %v123_v39  ;;  %v4865_v7 = vsub.f32 %v71_v27, %v126_v40  ;;  %v4867_v8 = vsub.f32 %v72_v28, %v129_v42  ;;  %v188_v15 = vand.u32 4294901760, %v187_v56 }
  0x49   :  { %v4872_v10 = vsub.f32 %v73_v32, %v132_v43  ;;  %v4874_v11 = vsub.f32 %v74_v33, %v135_v44  ;;  %v4876_v14 = vsub.f32 %v75_v34, %v138_v45  ;;  %v195_v16 = vand.u32 4294901760, %v194_v60 }
  0x4a   :  { %v208_v17 = vsub.f32 %v4822_v51, %v207_v62  ;;  %v221_v18 = vand.u32 4294901760, %v4840_v58  ;;  %v818_v20 = vsub.f32 %v4825_v52, %v5606_v63  ;;  %v228_v21 = vand.u32 4294901760, %v4854_v2 }
  0x4b   :  { %3965 = vmatpush3.bf16.msra.mxu0 %v4797_v29  ;;  %4109 = vmatpush3.bf16.msra.mxu1 %v4797_v29  ;;  %v235_v22 = vand.u32 4294901760, %v4857_v3  ;;  %v242_v23 = vand.u32 4294901760, %v4859_v4  ;;  %v249_v25 = vand.u32 4294901760, %v4861_v5  ;;  %v256_v26 = vand.u32 4294901760, %v4863_v6 }
  0x4c   :  { %3966 = vmatprep.subr.bf16.mxu0 %v4687_v0  ;;  %4110 = vmatprep.subr.bf16.mxu1 %v4687_v0  ;;  %v263_v27 = vand.u32 4294901760, %v4865_v7  ;;  %v270_v28 = vand.u32 4294901760, %v4867_v8  ;;  %v277_v30 = vand.u32 4294901760, %v4872_v10  ;;  %v284_v31 = vand.u32 4294901760, %v4874_v11 }
  0x4d   :  { %v291_v32 = vand.u32 4294901760, %v4876_v14  ;;  %v4897_v33 = vpack.c.bf16 %v193_v49, %v186_v47  ;;  %v4901_v34 = vpack.c.bf16 %v207_v62, %v200_v50  ;;  %v4903_v39 = vpack.c.bf16 %v221_v18, %v214_v9 }
  0x4e   :  { %v4905_v40 = vpack.c.bf16 %v235_v22, %v228_v21  ;;  %v4907_v42 = vpack.c.bf16 %v249_v25, %v242_v23  ;;  %v4909_v43 = vpack.c.bf16 %v263_v27, %v256_v26  ;;  %v4911_v44 = vpack.c.bf16 %v277_v30, %v270_v28 }
  0x4f   :  { %3968 = vmatpush3.bf16.msra.mxu0 %v4814_v46  ;;  %4112 = vmatpush3.bf16.msra.mxu1 %v4814_v46  ;;  %v4917_v45 = vpack.c.bf16 %v291_v32, %v284_v31  ;;  %v177_v47 = vand.u32 4294901760, %v176_v59  ;;  %v819_v49 = vand.u32 4294901760, %v818_v20  ;;  %v215_v50 = vsub.f32 %v4837_v57, %v214_v9 }
  0x50   :  { %3969 = vmatprep.subr.bf16.mxu0 %v4687_v0  ;;  %4113 = vmatprep.subr.bf16.mxu1 %v4687_v0  ;;  %v222_v56 = vsub.f32 %v4840_v58, %v221_v18  ;;  %v3979_v60 = vpack.c.bf16 %v195_v16, %v188_v15  ;;  %v202_v62 = vand.u32 4294901760, %v4849_v61  ;;  %v209_v63 = vand.u32 4294901760, %v208_v17 }
  0x51   :  { %v216_v59 = vand.u32 4294901760, %v215_v50  ;;  %v229_v18 = vsub.f32 %v4854_v2, %v228_v21  ;;  %v236_v48 = vsub.f32 %v4857_v3, %v235_v22  ;;  %v250_v17 = vsub.f32 %v4861_v5, %v249_v25 }
  0x52   :  { %v223_v20 = vand.u32 4294901760, %v222_v56  ;;  %v3982_v9 = vpack.c.bf16 %v209_v63, %v202_v62  ;;  %v243_v63 = vsub.f32 %v4859_v4, %v242_v23  ;;  %v257_v21 = vsub.f32 %v4863_v6, %v256_v26 }
  0x53   :  { %3971 = vmatpush3.bf16.msra.mxu0 %v4827_v53  ;;  %4115 = vmatpush3.bf16.msra.mxu1 %v4827_v53  ;;  %v230_v15 = vand.u32 4294901760, %v229_v18  ;;  %v237_v16 = vand.u32 4294901760, %v236_v48  ;;  %v264_v50 = vsub.f32 %v4865_v7, %v263_v27  ;;  %v271_v48 = vsub.f32 %v4867_v8, %v270_v28 }
  0x54   :  { %3972 = vmatprep.subr.bf16.mxu0 %v4687_v0  ;;  %4116 = vmatprep.subr.bf16.mxu1 %v4687_v0  ;;  %v3985_v61 = vpack.c.bf16 %v223_v20, %v216_v59  ;;  %v258_v25 = vand.u32 4294901760, %v257_v21  ;;  %v278_v26 = vsub.f32 %v4872_v10, %v277_v30  ;;  %v285_v28 = vsub.f32 %v4874_v11, %v284_v31 }
  0x55   :  { %v3988_v22 = vpack.c.bf16 %v237_v16, %v230_v15  ;;  %v265_v56 = vand.u32 4294901760, %v264_v50  ;;  %v292_v59 = vsub.f32 %v4876_v14, %v291_v32  ;;  %v4003_v32 = vpack.c.bf16 %v4806_v37, %v4799_v35  ;;  %v88_v16 = vld [vmem:[#allocation7 + $0x60] sm:$0xff] }
  0x56   :  { %v279_v62 = vand.u32 4294901760, %v278_v26  ;;  %v286_v20 = vand.u32 4294901760, %v285_v28  ;;  %v4006_v18 = vpack.c.bf16 %v4822_v51, %v4808_v38  ;;  %v4009_v35 = vpack.c.bf16 %v4840_v58, %v4837_v57 }
  0x57   :  { %3974 = vmatpush3.bf16.msra.mxu0 %v4829_v54  ;;  %4118 = vmatpush3.bf16.msra.mxu1 %v4829_v54  ;;  %v3994_v27 = vpack.c.bf16 %v265_v56, %v258_v25  ;;  %v4012_v37 = vpack.c.bf16 %v4857_v3, %v4854_v2  ;;  %v4015_v38 = vpack.c.bf16 %v4861_v5, %v4859_v4  ;;  %v5613_v2 = vand.u32 4294901760, %v4804_v36  ;;  %v5131_v4 = vld [vmem:[#allocation7 + $0x20] sm:$0xff]  ;;  %v5133_v5 = vld [vmem:[#allocation7 + $0x28] sm:$0xff] }
  0x58   :  { %3975 = vmatprep.subr.bf16.mxu0 %v4687_v0  ;;  %4119 = vmatprep.subr.bf16.mxu1 %v4687_v0  ;;  %v4018_v51 = vpack.c.bf16 %v4865_v7, %v4863_v6  ;;  %v4021_v57 = vpack.c.bf16 %v4872_v10, %v4867_v8  ;;  %v4024_v58 = vpack.c.bf16 %v4876_v14, %v4874_v11  ;;  %v5614_v3 = vand.u32 4294901760, %v4825_v52  ;;  %v5168_v14 = vld [vmem:[#allocation7 + $0x40] sm:$0xff] }
  0x59   :  { %v1402_v6 = vand.u32 4294901760, %v5131_v4  ;;  %v1405_v7 = vand.u32 4294901760, %v5133_v5 }
  0x5b   :  { %3977 = vmatpush3.bf16.msra.mxu0 %v4831_v55  ;;  %4121 = vmatpush3.bf16.msra.mxu1 %v4831_v55  ;;  %v5163_v8 = vpack.c.bf16 %v1405_v7, %v1402_v6 }
  0x5c   :  { %3978 = vmatprep.subr.bf16.mxu0 %v4687_v0  ;;  %4122 = vmatprep.subr.bf16.mxu1 %v4687_v0 }
  0x5e   :  { %3147 = vmatmul.mubr.f32.vlgmr.msra.gmra.mrb[0].mxu0 %v177_v47  ;;  %3357 = vmatmul.mubr.f32.vlgmr.msra.gmra.mrb[0].mxu1 %v819_v49  ;;  %v244_v47 = vand.u32 4294901760, %v243_v63  ;;  %v251_v49 = vand.u32 4294901760, %v250_v17  ;;  %v89_v63 = vld [vmem:[#allocation7 + $0x68] sm:$0xff]  ;;  %v1426_v17 = vand.u32 4294901760, %v88_v16 }
  0x5f   :  { %3980 = vmatpush3.bf16.msra.mxu0 %v3979_v60  ;;  %4124 = vmatpush3.bf16.msra.mxu1 %v3979_v60  ;;  %v272_v60 = vand.u32 4294901760, %v271_v48  ;;  %v1429_v21 = vand.u32 4294901760, %v89_v63 }
  0x60   :  { %3981 = vmatprep.subr.bf16.mxu0 %v4687_v0  ;;  %4125 = vmatprep.subr.bf16.mxu1 %v4687_v0  ;;  %v3991_v23 = vpack.c.bf16 %v251_v49, %v244_v47  ;;  %v90_v47 = vld [vmem:[#allocation7 + $0x70] sm:$0xff]  ;;  %v91_v49 = vld [vmem:[#allocation7 + $0x78] sm:$0xff]  ;;  %v5230_v28 = vsub.f32 %v88_v16, %v1426_v17 }
  0x61   :  { %3181 = vmatprep.mubr.msk.f32.mxu0 %vm4688_vm0, %v4689_v1  ;;  %3391 = vmatprep.mubr.msk.f32.mxu1 %vm4688_vm0, %v4689_v1  ;;  %v3997_v30 = vpack.c.bf16 %v279_v62, %v272_v60  ;;  %v1432_v50 = vand.u32 4294901760, %v90_v47  ;;  %v1435_v48 = vand.u32 4294901760, %v91_v49 }
  0x63   :  { %3983 = vmatpush3.bf16.msra.mxu0 %v3982_v9  ;;  %4127 = vmatpush3.bf16.msra.mxu1 %v3982_v9  ;;  %v293_v9 = vand.u32 4294901760, %v292_v59  ;;  %v5232_v59 = vsub.f32 %v89_v63, %v1429_v21 }
  0x64   :  { %3984 = vmatprep.subr.bf16.mxu0 %v4687_v0  ;;  %4128 = vmatprep.subr.bf16.mxu1 %v4687_v0 }
  0x65   :  { %v4000_v31 = vpack.c.bf16 %v293_v9, %v286_v20  ;;  %v5611_v9 = vand.u32 4294901760, %v5230_v28 }
  0x67   :  { %3986 = vmatpush3.bf16.msra.mxu0 %v3985_v61  ;;  %4130 = vmatpush3.bf16.msra.mxu1 %v3985_v61 }
  0x68   :  { %3987 = vmatprep.subr.bf16.mxu0 %v4687_v0  ;;  %4131 = vmatprep.subr.bf16.mxu1 %v4687_v0 }
  0x6b   :  { %3989 = vmatpush3.bf16.msra.mxu0 %v3988_v22  ;;  %4133 = vmatpush3.bf16.msra.mxu1 %v3988_v22  ;;  %v5206_v22 = vpack.c.bf16 %v1429_v21, %v1426_v17  ;;  %v5266_v17 = vpack.c.bf16 %v5232_v59, %v5230_v28 }
  0x6c   :  { %3990 = vmatprep.subr.bf16.mxu0 %v4687_v0  ;;  %4134 = vmatprep.subr.bf16.mxu1 %v4687_v0 }
  0x6f   :  { %3992 = vmatpush3.bf16.msra.mxu0 %v3991_v23  ;;  %4136 = vmatpush3.bf16.msra.mxu1 %v3991_v23  ;;  %v5212_v23 = vpack.c.bf16 %v1435_v48, %v1432_v50 }
  0x70   :  { %3993 = vmatprep.subr.bf16.mxu0 %v4687_v0  ;;  %4137 = vmatprep.subr.bf16.mxu1 %v4687_v0 }
  0x73   :  { %3995 = vmatpush3.bf16.msra.mxu0 %v3994_v27  ;;  %4139 = vmatpush3.bf16.msra.mxu1 %v3994_v27 }
  0x74   :  { %3996 = vmatprep.subr.bf16.mxu0 %v4687_v0  ;;  %4140 = vmatprep.subr.bf16.mxu1 %v4687_v0 }
  0x77   :  { %3998 = vmatpush3.bf16.msra.mxu0 %v3997_v30  ;;  %4142 = vmatpush3.bf16.msra.mxu1 %v3997_v30 }
  0x78   :  { %3999 = vmatprep.subr.bf16.mxu0 %v4687_v0  ;;  %4143 = vmatprep.subr.bf16.mxu1 %v4687_v0 }
  0x7b   :  { %4001 = vmatpush3.bf16.msra.mxu0 %v4000_v31  ;;  %4145 = vmatpush3.bf16.msra.mxu1 %v4000_v31  ;;  %v5610_v31 = vand.u32 4294901760, %v5232_v59 }
  0x7c   :  { %4002 = vmatprep.subr.bf16.mxu0 %v4687_v0  ;;  %4146 = vmatprep.subr.bf16.mxu1 %v4687_v0 }
  0x7e   :  { %3182 = vmatmul.mubr.f32.vlgmr.msra.gmra.mrb[0].mxu0 %v4793_v24  ;;  %3392 = vmatmul.mubr.f32.vlgmr.msra.gmra.mrb[0].mxu1 %v4810_v41 }
  0x7f   :  { %4004 = vmatpush3.bf16.msra.mxu0 %v4003_v32  ;;  %4148 = vmatpush3.bf16.msra.mxu1 %v4003_v32 }
  0x80   :  { %4005 = vmatprep.subr.bf16.mxu0 %v4687_v0  ;;  %4149 = vmatprep.subr.bf16.mxu1 %v4687_v0 }
  0x81   :  { %3216 = vmatprep.mubr.msk.f32.mxu0 %vm4688_vm0, %v4689_v1  ;;  %3426 = vmatprep.mubr.msk.f32.mxu1 %vm4688_vm0, %v4689_v1 }
  0x83   :  { %4007 = vmatpush3.bf16.msra.mxu0 %v4006_v18  ;;  %4151 = vmatpush3.bf16.msra.mxu1 %v4006_v18  ;;  %v1568_v18 = vsub.f32 %v5230_v28, %v5611_v9 }
  0x84   :  { %4008 = vmatprep.subr.bf16.mxu0 %v4687_v0  ;;  %4152 = vmatprep.subr.bf16.mxu1 %v4687_v0 }
  0x87   :  { %4010 = vmatpush3.bf16.msra.mxu0 %v4009_v35  ;;  %4154 = vmatpush3.bf16.msra.mxu1 %v4009_v35  ;;  %v5241_v35 = vsub.f32 %v90_v47, %v1432_v50 }
  0x88   :  { %4011 = vmatprep.subr.bf16.mxu0 %v4687_v0  ;;  %4155 = vmatprep.subr.bf16.mxu1 %v4687_v0 }
  0x8b   :  { %4013 = vmatpush3.bf16.msra.mxu0 %v4012_v37  ;;  %4157 = vmatpush3.bf16.msra.mxu1 %v4012_v37  ;;  %v5243_v37 = vsub.f32 %v91_v49, %v1435_v48 }
  0x8c   :  { %4014 = vmatprep.subr.bf16.mxu0 %v4687_v0  ;;  %4158 = vmatprep.subr.bf16.mxu1 %v4687_v0 }
  0x8d   :  { %v5270_v21 = vpack.c.bf16 %v5243_v37, %v5241_v35 }
  0x8f   :  { %4016 = vmatpush3.bf16.msra.mxu0 %v4015_v38  ;;  %4160 = vmatpush3.bf16.msra.mxu1 %v4015_v38  ;;  %v1575_v38 = vsub.f32 %v5232_v59, %v5610_v31 }
  0x90   :  { %4017 = vmatprep.subr.bf16.mxu0 %v4687_v0  ;;  %4161 = vmatprep.subr.bf16.mxu1 %v4687_v0 }
  0x93   :  { %4019 = vmatpush3.bf16.msra.mxu0 %v4018_v51  ;;  %4163 = vmatpush3.bf16.msra.mxu1 %v4018_v51  ;;  %v1569_v51 = vand.u32 4294901760, %v1568_v18 }
  0x94   :  { %4020 = vmatprep.subr.bf16.mxu0 %v4687_v0  ;;  %4164 = vmatprep.subr.bf16.mxu1 %v4687_v0 }
  0x97   :  { %4022 = vmatpush3.bf16.msra.mxu0 %v4021_v57  ;;  %4166 = vmatpush3.bf16.msra.mxu1 %v4021_v57  ;;  %v5609_v57 = vand.u32 4294901760, %v5241_v35 }
  0x98   :  { %4023 = vmatprep.subr.bf16.mxu0 %v4687_v0  ;;  %4167 = vmatprep.subr.bf16.mxu1 %v4687_v0 }
  0x9b   :  { %4025 = vmatpush3.bf16.msra.mxu0 %v4024_v58  ;;  %4169 = vmatpush3.bf16.msra.mxu1 %v4024_v58  ;;  %v5608_v58 = vand.u32 4294901760, %v5243_v37 }
  0x9c   :  { %4026 = vmatprep.subr.bf16.mxu0 %v4687_v0  ;;  %4170 = vmatprep.subr.bf16.mxu1 %v4687_v0 }
  0x9e   :  { %3217 = vmatmul.mubr.f32.vlgmr.msra.gmra.mrb[0].mxu0 %v4804_v36  ;;  %3427 = vmatmul.mubr.f32.vlgmr.msra.gmra.mrb[0].mxu1 %v4825_v52  ;;  %v5116_v36 = vld [vmem:[#allocation7 + $0x10] sm:$0xff] }
  0x9f   :  { %4028 = vmatpush3.bf16.msra.mxu0 %v4771_v12  ;;  %4172 = vmatpush3.bf16.msra.mxu1 %v4771_v12 }
  0xa0   :  { %4029 = vmatprep.subr.bf16.mxu0 %v4687_v0  ;;  %4173 = vmatprep.subr.bf16.mxu1 %v4687_v0 }
  0xa1   :  { %3251 = vmatprep.mubr.msk.f32.mxu0 %vm4688_vm0, %v4689_v1  ;;  %3461 = vmatprep.mubr.msk.f32.mxu1 %vm4688_vm0, %v4689_v1 }
  0xa3   :  { %4031 = vmatpush3.bf16.msra.mxu0 %v4775_v13  ;;  %4175 = vmatpush3.bf16.msra.mxu1 %v4775_v13 }
  0xa4   :  { %4032 = vmatprep.subr.bf16.mxu0 %v4687_v0  ;;  %4176 = vmatprep.subr.bf16.mxu1 %v4687_v0 }
  0xa7   :  { %4034 = vmatpush3.bf16.msra.mxu0 %v4787_v19  ;;  %4178 = vmatpush3.bf16.msra.mxu1 %v4787_v19 }
  0xa8   :  { %4035 = vmatprep.subr.bf16.mxu0 %v4687_v0  ;;  %4179 = vmatprep.subr.bf16.mxu1 %v4687_v0 }
  0xab   :  { %4037 = vmatpush3.bf16.msra.mxu0 %v4797_v29  ;;  %4181 = vmatpush3.bf16.msra.mxu1 %v4797_v29 }
  0xac   :  { %4038 = vmatprep.subr.bf16.mxu0 %v4687_v0  ;;  %4182 = vmatprep.subr.bf16.mxu1 %v4687_v0 }
  0xaf   :  { %4040 = vmatpush3.bf16.msra.mxu0 %v4814_v46  ;;  %4184 = vmatpush3.bf16.msra.mxu1 %v4814_v46 }
  0xb0   :  { %4041 = vmatprep.subr.bf16.mxu0 %v4687_v0  ;;  %4185 = vmatprep.subr.bf16.mxu1 %v4687_v0 }
  0xb3   :  { %4043 = vmatpush3.bf16.msra.mxu0 %v4827_v53  ;;  %4187 = vmatpush3.bf16.msra.mxu1 %v4827_v53 }
  0xb4   :  { %4044 = vmatprep.subr.bf16.mxu0 %v4687_v0  ;;  %4188 = vmatprep.subr.bf16.mxu1 %v4687_v0 }
  0xb7   :  { %4046 = vmatpush3.bf16.msra.mxu0 %v4829_v54  ;;  %4190 = vmatpush3.bf16.msra.mxu1 %v4829_v54 }
  0xb8   :  { %4047 = vmatprep.subr.bf16.mxu0 %v4687_v0  ;;  %4191 = vmatprep.subr.bf16.mxu1 %v4687_v0 }
  0xbb   :  { %4049 = vmatpush3.bf16.msra.mxu0 %v4831_v55  ;;  %4193 = vmatpush3.bf16.msra.mxu1 %v4831_v55 }
  0xbc   :  { %4050 = vmatprep.subr.bf16.mxu0 %v4687_v0  ;;  %4194 = vmatprep.subr.bf16.mxu1 %v4687_v0 }
  0xbe   :  { %3252 = vmatmul.mubr.f32.vlgmr.msra.gmra.mrb[0].mxu0 %v5613_v2  ;;  %3462 = vmatmul.mubr.f32.vlgmr.msra.gmra.mrb[0].mxu1 %v5614_v3  ;;  %v1576_v2 = vand.u32 4294901760, %v1575_v38  ;;  %v1582_v3 = vsub.f32 %v5241_v35, %v5609_v57 }
  0xbf   :  { %4052 = vmatpush3.bf16.msra.mxu0 %v4897_v33  ;;  %4196 = vmatpush3.bf16.msra.mxu1 %v4897_v33  ;;  %v5170_v33 = vld [vmem:[#allocation7 + $0x48] sm:$0xff] }
  0xc0   :  { %4053 = vmatprep.subr.bf16.mxu0 %v4687_v0  ;;  %4197 = vmatprep.subr.bf16.mxu1 %v4687_v0 }
  0xc1   :  { %3286 = vmatprep.mubr.msk.f32.mxu0 %vm4688_vm0, %v4689_v1  ;;  %3496 = vmatprep.mubr.msk.f32.mxu1 %vm4688_vm0, %v4689_v1 }
  0xc3   :  { %4055 = vmatpush3.bf16.msra.mxu0 %v4901_v34  ;;  %4199 = vmatpush3.bf16.msra.mxu1 %v4901_v34 }
  0xc4   :  { %4056 = vmatprep.subr.bf16.mxu0 %v4687_v0  ;;  %4200 = vmatprep.subr.bf16.mxu1 %v4687_v0 }
  0xc7   :  { %4058 = vmatpush3.bf16.msra.mxu0 %v4903_v39  ;;  %4202 = vmatpush3.bf16.msra.mxu1 %v4903_v39  ;;  %v1414_v39 = vand.u32 4294901760, %v5168_v14 }
  0xc8   :  { %4059 = vmatprep.subr.bf16.mxu0 %v4687_v0  ;;  %4203 = vmatprep.subr.bf16.mxu1 %v4687_v0 }
  0xcb   :  { %4061 = vmatpush3.bf16.msra.mxu0 %v4905_v40  ;;  %4205 = vmatpush3.bf16.msra.mxu1 %v4905_v40  ;;  %v1417_v40 = vand.u32 4294901760, %v5170_v33 }
  0xcc   :  { %4062 = vmatprep.subr.bf16.mxu0 %v4687_v0  ;;  %4206 = vmatprep.subr.bf16.mxu1 %v4687_v0 }
  0xcf   :  { %4064 = vmatpush3.bf16.msra.mxu0 %v4907_v42  ;;  %4208 = vmatpush3.bf16.msra.mxu1 %v4907_v42  ;;  %v5191_v42 = vpack.c.bf16 %v1417_v40, %v1414_v39 }
  0xd0   :  { %4065 = vmatprep.subr.bf16.mxu0 %v4687_v0  ;;  %4209 = vmatprep.subr.bf16.mxu1 %v4687_v0 }
  0xd3   :  { %4067 = vmatpush3.bf16.msra.mxu0 %v4909_v43  ;;  %4211 = vmatpush3.bf16.msra.mxu1 %v4909_v43  ;;  %v86_v43 = vld [vmem:[#allocation7 + $0x50] sm:$0xff] }
  0xd4   :  { %4068 = vmatprep.subr.bf16.mxu0 %v4687_v0  ;;  %4212 = vmatprep.subr.bf16.mxu1 %v4687_v0 }
  0xd7   :  { %4070 = vmatpush3.bf16.msra.mxu0 %v4911_v44  ;;  %4214 = vmatpush3.bf16.msra.mxu1 %v4911_v44  ;;  %v87_v44 = vld [vmem:[#allocation7 + $0x58] sm:$0xff] }
  0xd8   :  { %4071 = vmatprep.subr.bf16.mxu0 %v4687_v0  ;;  %4215 = vmatprep.subr.bf16.mxu1 %v4687_v0  ;;  %v1423_v61 = vand.u32 4294901760, %v87_v44 }
  0xda   :  { %v5220_v56 = vsub.f32 %v87_v44, %v1423_v61  ;;  %v5256_v44 = vpack.c.bf16 %v1576_v2, %v1569_v51  ;;  %v5312_v51 = vsub.f32 %v5133_v5, %v1405_v7 }
  0xdb   :  { %4073 = vmatpush3.bf16.msra.mxu0 %v4917_v45  ;;  %4217 = vmatpush3.bf16.msra.mxu1 %v4917_v45  ;;  %v1420_v45 = vand.u32 4294901760, %v86_v43 }
  0xdc   :  { %4074 = vmatprep.subr.bf16.mxu0 %v4687_v0  ;;  %4218 = vmatprep.subr.bf16.mxu1 %v4687_v0  ;;  %v5612_v60 = vand.u32 4294901760, %v5220_v56 }
  0xdd   :  { %v5200_v15 = vpack.c.bf16 %v1423_v61, %v1420_v45  ;;  %v5218_v25 = vsub.f32 %v86_v43, %v1420_v45  ;;  %v1589_v43 = vsub.f32 %v5243_v37, %v5608_v58  ;;  %v1583_v45 = vand.u32 4294901760, %v1582_v3 }
  0xde   :  { %3287 = vmatmul.mubr.f32.vlgmr.msra.gmra.mrb[0].mxu0 %v4793_v24  ;;  %3497 = vmatmul.mubr.f32.vlgmr.msra.gmra.mrb[0].mxu1 %v4810_v41  ;;  %v1561_v62 = vsub.f32 %v5220_v56, %v5612_v60 }
  0xdf   :  { %4076 = vmatpush3.bf16.msra.mxu0 %v4771_v12  ;;  %4220 = vmatpush3.bf16.msra.mxu1 %v4771_v12  ;;  %v5106_v12 = vld [vmem:[#allocation7] sm:$0xff]  ;;  %v1553_v26 = vand.u32 4294901760, %v5218_v25  ;;  %v1590_v61 = vand.u32 4294901760, %v1589_v43  ;;  %v5262_v63 = vpack.c.bf16 %v5220_v56, %v5218_v25 }
  0xe0   :  { %4077 = vmatprep.subr.bf16.mxu0 %v4687_v0  ;;  %4221 = vmatprep.subr.bf16.mxu1 %v4687_v0  ;;  %v1562_v20 = vand.u32 4294901760, %v1561_v62 }
  0xe1   :  { %3321 = vmatprep.mubr.msk.f32.mxu0 %vm4688_vm0, %v4689_v1  ;;  %3531 = vmatprep.mubr.msk.f32.mxu1 %vm4688_vm0, %v4689_v1  ;;  %v1554_v27 = vsub.f32 %v5218_v25, %v1553_v26  ;;  %v5258_v16 = vpack.c.bf16 %v1590_v61, %v1583_v45  ;;  %v5618_v25 = vand.u32 4294901760, %v5241_v35 }
  0xe3   :  { %4079 = vmatpush3.bf16.msra.mxu0 %v4775_v13  ;;  %4223 = vmatpush3.bf16.msra.mxu1 %v4775_v13  ;;  %v5108_v13 = vld [vmem:[#allocation7 + $0x8] sm:$0xff]  ;;  %v1555_v30 = vand.u32 4294901760, %v1554_v27 }
  0xe4   :  { %4080 = vmatprep.subr.bf16.mxu0 %v4687_v0  ;;  %4224 = vmatprep.subr.bf16.mxu1 %v4687_v0 }
  0xe5   :  { %v5236_v32 = vpack.c.bf16 %v1562_v20, %v1555_v30 }
  0xe7   :  { %4082 = vmatpush3.bf16.msra.mxu0 %v4787_v19  ;;  %4226 = vmatpush3.bf16.msra.mxu1 %v4787_v19  ;;  %v1390_v19 = vand.u32 4294901760, %v5106_v12 }
  0xe8   :  { %4083 = vmatprep.subr.bf16.mxu0 %v4687_v0  ;;  %4227 = vmatprep.subr.bf16.mxu1 %v4687_v0 }
  0xe9   :  { %v5275_v47 = vsub.f32 %v5106_v12, %v1390_v19 }
  0xeb   :  { %4085 = vmatpush3.bf16.msra.mxu0 %v4797_v29  ;;  %4229 = vmatpush3.bf16.msra.mxu1 %v4797_v29  ;;  %v1393_v29 = vand.u32 4294901760, %v5108_v13  ;;  %v1483_v50 = vand.u32 4294901760, %v5275_v47 }
  0xec   :  { %4086 = vmatprep.subr.bf16.mxu0 %v4687_v0  ;;  %4230 = vmatprep.subr.bf16.mxu1 %v4687_v0 }
  0xed   :  { %v5126_v52 = vpack.c.bf16 %v1393_v29, %v1390_v19  ;;  %v5280_v49 = vsub.f32 %v5108_v13, %v1393_v29  ;;  %v1484_v13 = vsub.f32 %v5275_v47, %v1483_v50 }
  0xef   :  { %4088 = vmatpush3.bf16.msra.mxu0 %v4814_v46  ;;  %4232 = vmatpush3.bf16.msra.mxu1 %v4814_v46  ;;  %v5118_v46 = vld [vmem:[#allocation7 + $0x18] sm:$0xff]  ;;  %v1490_v48 = vand.u32 4294901760, %v5280_v49  ;;  %v1485_v2 = vand.u32 4294901760, %v1484_v13  ;;  %v1518_v13 = vand.u32 4294901760, %v5312_v51 }
  0xf0   :  { %4089 = vmatprep.subr.bf16.mxu0 %v4687_v0  ;;  %4233 = vmatprep.subr.bf16.mxu1 %v4687_v0 }
  0xf1   :  { %v1491_v18 = vsub.f32 %v5280_v49, %v1490_v48 }
  0xf3   :  { %4091 = vmatpush3.bf16.msra.mxu0 %v4827_v53  ;;  %4235 = vmatpush3.bf16.msra.mxu1 %v4827_v53  ;;  %v1396_v53 = vand.u32 4294901760, %v5116_v36  ;;  %v1492_v45 = vand.u32 4294901760, %v1491_v18 }
  0xf4   :  { %4092 = vmatprep.subr.bf16.mxu0 %v4687_v0  ;;  %4236 = vmatprep.subr.bf16.mxu1 %v4687_v0 }
  0xf5   :  { %v5287_v27 = vsub.f32 %v5116_v36, %v1396_v53 }
  0xf7   :  { %4094 = vmatpush3.bf16.msra.mxu0 %v4829_v54  ;;  %4238 = vmatpush3.bf16.msra.mxu1 %v4829_v54  ;;  %v1399_v54 = vand.u32 4294901760, %v5118_v46  ;;  %v1497_v36 = vand.u32 4294901760, %v5287_v27 }
  0xf8   :  { %4095 = vmatprep.subr.bf16.mxu0 %v4687_v0  ;;  %4239 = vmatprep.subr.bf16.mxu1 %v4687_v0 }
  0xf9   :  { %v5292_v62 = vsub.f32 %v5118_v46, %v1399_v54  ;;  %v5305_v46 = vsub.f32 %v5131_v4, %v1402_v6  ;;  %v1498_v61 = vsub.f32 %v5287_v27, %v1497_v36 }
  0xfb   :  { %4097 = vmatpush3.bf16.msra.mxu0 %v4831_v55  ;;  %4241 = vmatpush3.bf16.msra.mxu1 %v4831_v55  ;;  %v5143_v55 = vpack.c.bf16 %v1399_v54, %v1396_v53  ;;  %v1504_v53 = vand.u32 4294901760, %v5292_v62  ;;  %v1511_v6 = vand.u32 4294901760, %v5305_v46  ;;  %v1499_v18 = vand.u32 4294901760, %v1498_v61 }
  0xfc   :  { %4242 = vmatprep.subr.bf16.mxu0 %v4687_v0  ;;  %4386 = vmatprep.subr.bf16.mxu1 %v4687_v0 }
  0xfd   :  { %v1505_v4 = vsub.f32 %v5292_v62, %v1504_v53 }
  0xfe   :  { %3322 = vmatmul.mubr.f32.vlgmr.msra.gmra.mrb[0].mxu0 %v4793_v24  ;;  %3532 = vmatmul.mubr.f32.vlgmr.msra.gmra.mrb[0].mxu1 %v4810_v41  ;;  %v5150_v24 = vld [vmem:[#allocation7 + $0x30] sm:$0xff]  ;;  %v5152_v41 = vld [vmem:[#allocation7 + $0x38] sm:$0xff] }
  0xff   :  { %4244 = vmatpush3.bf16.msra.mxu0 %v5126_v52  ;;  %3566 = vmatprep.mubr.msk.f32.mxu0 %vm4688_vm0, %v4689_v1  ;;  %v1408_v10 = vand.u32 4294901760, %v5150_v24  ;;  %v1411_v11 = vand.u32 4294901760, %v5152_v41 }
 0x100   :  { %4245 = vmatprep.subr.bf16.mxu0 %v4687_v0  ;;  %4388 = vmatpush3.bf16.msra.mxu1 %v5126_v52 }
 0x101   :  { %4389 = vmatprep.subr.bf16.mxu1 %v4687_v0  ;;  %3776 = vmatprep.mubr.msk.f32.mxu1 %vm4688_vm0, %v4689_v1  ;;  %v5179_v34 = vpack.c.bf16 %v1411_v11, %v1408_v10  ;;  %v5327_v5 = vsub.f32 %v5150_v24, %v1408_v10  ;;  %v5332_v7 = vsub.f32 %v5152_v41, %v1411_v11  ;;  %v1506_v24 = vand.u32 4294901760, %v1505_v4 }
 0x102   :  { %v1512_v10 = vsub.f32 %v5305_v46, %v1511_v6 }
 0x103   :  { %4247 = vmatpush3.bf16.msra.mxu0 %v5143_v55  ;;  %v1525_v41 = vand.u32 4294901760, %v5327_v5  ;;  %v1532_v11 = vand.u32 4294901760, %v5332_v7  ;;  %v4270_v61 = vpack.c.bf16 %v1506_v24, %v1499_v18 }
 0x104   :  { %4248 = vmatprep.subr.bf16.mxu0 %v4687_v0  ;;  %4391 = vmatpush3.bf16.msra.mxu1 %v5143_v55 }
 0x105   :  { %4392 = vmatprep.subr.bf16.mxu1 %v4687_v0  ;;  %v1526_v4 = vsub.f32 %v5327_v5, %v1525_v41 }
 0x107   :  { %4250 = vmatpush3.bf16.msra.mxu0 %v5163_v8 }
 0x108   :  { %4251 = vmatprep.subr.bf16.mxu0 %v4687_v0  ;;  %4394 = vmatpush3.bf16.msra.mxu1 %v5163_v8 }
 0x109   :  { %4395 = vmatprep.subr.bf16.mxu1 %v4687_v0 }
 0x10b   :  { %4253 = vmatpush3.bf16.msra.mxu0 %v5179_v34 }
 0x10c   :  { %4254 = vmatprep.subr.bf16.mxu0 %v4687_v0  ;;  %4397 = vmatpush3.bf16.msra.mxu1 %v5179_v34 }
 0x10d   :  { %4398 = vmatprep.subr.bf16.mxu1 %v4687_v0 }
 0x10f   :  { %4256 = vmatpush3.bf16.msra.mxu0 %v5191_v42 }
 0x110   :  { %4257 = vmatprep.subr.bf16.mxu0 %v4687_v0  ;;  %4400 = vmatpush3.bf16.msra.mxu1 %v5191_v42 }
 0x111   :  { %4401 = vmatprep.subr.bf16.mxu1 %v4687_v0 }
 0x113   :  { %4259 = vmatpush3.bf16.msra.mxu0 %v5200_v15 }
 0x114   :  { %4403 = vmatpush3.bf16.msra.mxu1 %v5200_v15  ;;  %4260 = vmatprep.subr.bf16.mxu0 %v4687_v0 }
 0x115   :  { %4404 = vmatprep.subr.bf16.mxu1 %v4687_v0 }
 0x117   :  { %4262 = vmatpush3.bf16.msra.mxu0 %v5206_v22 }
 0x118   :  { %4406 = vmatpush3.bf16.msra.mxu1 %v5206_v22  ;;  %4263 = vmatprep.subr.bf16.mxu0 %v4687_v0 }
 0x119   :  { %4407 = vmatprep.subr.bf16.mxu1 %v4687_v0 }
 0x11b   :  { %4265 = vmatpush3.bf16.msra.mxu0 %v5212_v23 }
 0x11c   :  { %4409 = vmatpush3.bf16.msra.mxu1 %v5212_v23  ;;  %4266 = vmatprep.subr.bf16.mxu0 %v4687_v0 }
 0x11d   :  { %4410 = vmatprep.subr.bf16.mxu1 %v4687_v0 }
 0x1d1   :  { %v729_v12 = vpop.f32.mrb[0].mxu0  ;;  %v1371_v19 = vpop.f32.mrb[0].mxu1 }
 0x1d2   :  { %v1375_v29 = vmul.f32 0.03125, %v729_v12  ;;  %v3323_v30 = vpop.f32.mrb[1].mxu0  ;;  %v3533_v20 = vpop.f32.mrb[1].mxu1 }
 0x1d3   :  { %v5339_v20 = vpack.c.bf16 %v1492_v45, %v1485_v2  ;;  %v5352_v2 = vsub.f32 %v5168_v14, %v1414_v39  ;;  %v1513_v14 = vand.u32 4294901760, %v1512_v10 }
 0x1d4   :  { %v1376_v54 = vmul.f32 %v1375_v29, %v729_v12  ;;  %v5307_v38 = vand.u32 4294901760, %v1375_v29 }
 0x1d5   :  { %v1539_v58 = vand.u32 4294901760, %v5352_v2 }
 0x1d6   :  { %v5315_v3 = vsub.f32 %v1375_v29, %v5307_v38  ;;  %v1377_v43 = vsub.f32 %v1371_v19, %v1376_v54  ;;  %v1519_v54 = vsub.f32 %v5312_v51, %v1518_v13 }
 0x1d7   :  { %v1540_v24 = vsub.f32 %v5352_v2, %v1539_v58 }
 0x1d8   :  { %v1378_v12 = vmul.f32 0.032258064, %v1377_v43  ;;  %v1472_v19 = vand.u32 4294901760, %v5315_v3  ;;  %v5357_v43 = vsub.f32 %v5170_v33, %v1417_v40  ;;  %v1520_v39 = vand.u32 4294901760, %v1519_v54 }
 0x1d9   :  { %v1527_v40 = vand.u32 4294901760, %v1526_v4  ;;  %v1541_v4 = vand.u32 4294901760, %v1540_v24 }
 0x1da   :  { %v1379_v29 = vmax.f32 %v1378_v12, 0.0  ;;  %v1473_v30 = vsub.f32 %v5315_v3, %v1472_v19  ;;  %v1533_v12 = vsub.f32 %v5332_v7, %v1532_v11  ;;  %v1546_v33 = vand.u32 4294901760, %v5357_v43 }
 0x1db   :  { %v4273_v18 = vpack.c.bf16 %v1520_v39, %v1513_v14 }
 0x1dc   :  { %4581 = vrsqrt.f32 %v1379_v29  ;;  %v1474_v45 = vand.u32 4294901760, %v1473_v30  ;;  %v1534_v30 = vand.u32 4294901760, %v1533_v12  ;;  %v1547_v10 = vsub.f32 %v5357_v43, %v1546_v33 }
 0x1dd   :  { %vm1382_vm1 = vcmp.eq.f32.partialorder %v1379_v29, inf  ;;  %v1385_v31 = vand.u32 2147483648, %v1379_v29  ;;  %vm1384_vm2 = vcmp.eq.f32.partialorder %v1379_v29, 0.0 }
 0x1de   :  { %3567 = vmatmul.mubr.f32.vlgmr.msra.gmra.mrb[2].mxu0 %v1474_v45  ;;  %v4276_v57 = vpack.c.bf16 %v1534_v30, %v1527_v40  ;;  %v1548_v12 = vand.u32 4294901760, %v1547_v10  ;;  %v4294_v10 = vpack.c.bf16 %v5292_v62, %v5287_v27 }
 0x1df   :  { %4268 = vmatpush3.bf16.msra.mxu0 %v5339_v20  ;;  %3601 = vmatprep.mubr.msk.f32.mxu0 %vm4688_vm0, %v4689_v1 }
 0x1e0   :  { %4269 = vmatprep.subr.bf16.mxu0 %v4687_v0  ;;  %v4279_v60 = vpack.c.bf16 %v1548_v12, %v1541_v4  ;;  %v4300_v4 = vpack.c.bf16 %v5332_v7, %v5327_v5 }
 0x1e3   :  { %4271 = vmatpush3.bf16.msra.mxu0 %v4270_v61 }
 0x1e4   :  { %4272 = vmatprep.subr.bf16.mxu0 %v4687_v0 }
 0x1e6   :  { %v4582_v54 = vpop.eup %4581 }
 0x1e7   :  { %v1381_v45 = vmul.f32 %v4582_v54, %v1379_v29  ;;  %4274 = vmatpush3.bf16.msra.mxu0 %v4273_v18 }
 0x1e8   :  { %4275 = vmatprep.subr.bf16.mxu0 %v4687_v0 }
 0x1e9   :  { %v1383_v9 = vsel %vm1382_vm1, %v1379_v29, %v1381_v45  ;;  %v4297_v45 = vpack.c.bf16 %v5312_v51, %v5305_v46 }
 0x1ea   :  { %v1386_v14 = vsel %vm1384_vm2, %v1385_v31, %v1383_v9  ;;  %v4291_v31 = vpack.c.bf16 %v5280_v49, %v5275_v47 }
 0x1eb   :  { %v1387_v39 = vadd.f32 1e-06, %v1386_v14  ;;  %4277 = vmatpush3.bf16.msra.mxu0 %v4276_v57 }
 0x1ec   :  { %4278 = vmatprep.subr.bf16.mxu0 %v4687_v0 }
 0x1ed   :  { %4583 = vrcp.f32 %v1387_v39 }
 0x1ef   :  { %4280 = vmatpush3.bf16.msra.mxu0 %v4279_v60 }
 0x1f0   :  { %4281 = vmatprep.subr.bf16.mxu0 %v4687_v0 }
 0x1f3   :  { %4283 = vmatpush3.bf16.msra.mxu0 %v5236_v32 }
 0x1f4   :  { %4284 = vmatprep.subr.bf16.mxu0 %v4687_v0 }
 0x1f7   :  { %v4584_v40 = vpop.eup %4583  ;;  %4286 = vmatpush3.bf16.msra.mxu0 %v5256_v44 }
 0x1f8   :  { %v5384_v29 = vand.u32 4294901760, %v4584_v40  ;;  %4287 = vmatprep.subr.bf16.mxu0 %v4687_v0 }
 0x1fa   :  { %v5388_v9 = vsub.f32 %v4584_v40, %v5384_v29 }
 0x1fb   :  { %4289 = vmatpush3.bf16.msra.mxu0 %v5258_v16 }
 0x1fc   :  { %v2113_v30 = vand.u32 4294901760, %v5388_v9  ;;  %4290 = vmatprep.subr.bf16.mxu0 %v4687_v0 }
 0x1fe   :  { %v2114_v24 = vsub.f32 %v5388_v9, %v2113_v30  ;;  %3602 = vmatmul.mubr.f32.vlgmr.msra.gmra.mrb[2].mxu0 %v5307_v38 }
 0x1ff   :  { %4292 = vmatpush3.bf16.msra.mxu0 %v4291_v31  ;;  %3636 = vmatprep.mubr.msk.f32.mxu0 %vm4688_vm0, %v4689_v1 }
 0x200   :  { %v2115_v54 = vand.u32 4294901760, %v2114_v24  ;;  %4293 = vmatprep.subr.bf16.mxu0 %v4687_v0 }
 0x202   :  { %3777 = vmatmul.mubr.f32.vlgmr.msra.gmra.mrb[2].mxu1 %v2115_v54 }
 0x203   :  { %4412 = vmatpush3.bf16.msra.mxu1 %v5339_v20  ;;  %3811 = vmatprep.mubr.msk.f32.mxu1 %vm4688_vm0, %v4689_v1  ;;  %v4303_v20 = vpack.c.bf16 %v5357_v43, %v5352_v2 }
 0x204   :  { %4295 = vmatpush3.bf16.msra.mxu0 %v4294_v10  ;;  %4413 = vmatprep.subr.bf16.mxu1 %v4687_v0 }
 0x205   :  { %4296 = vmatprep.subr.bf16.mxu0 %v4687_v0 }
 0x207   :  { %4415 = vmatpush3.bf16.msra.mxu1 %v4270_v61 }
 0x208   :  { %4298 = vmatpush3.bf16.msra.mxu0 %v4297_v45  ;;  %4416 = vmatprep.subr.bf16.mxu1 %v4687_v0 }
 0x209   :  { %4299 = vmatprep.subr.bf16.mxu0 %v4687_v0 }
 0x20b   :  { %4418 = vmatpush3.bf16.msra.mxu1 %v4273_v18 }
 0x20c   :  { %4301 = vmatpush3.bf16.msra.mxu0 %v4300_v4  ;;  %4419 = vmatprep.subr.bf16.mxu1 %v4687_v0 }
 0x20d   :  { %4302 = vmatprep.subr.bf16.mxu0 %v4687_v0 }
 0x20f   :  { %4421 = vmatpush3.bf16.msra.mxu1 %v4276_v57  ;;  %v4345_v57 = vpack.c.bf16 %v1518_v13, %v1511_v6 }
 0x210   :  { %4304 = vmatpush3.bf16.msra.mxu0 %v4303_v20  ;;  %4422 = vmatprep.subr.bf16.mxu1 %v4687_v0 }
 0x211   :  { %4305 = vmatprep.subr.bf16.mxu0 %v4687_v0 }
 0x213   :  { %4424 = vmatpush3.bf16.msra.mxu1 %v4279_v60  ;;  %v4339_v60 = vpack.c.bf16 %v1490_v48, %v1483_v50 }
 0x214   :  { %4307 = vmatpush3.bf16.msra.mxu0 %v5262_v63  ;;  %4425 = vmatprep.subr.bf16.mxu1 %v4687_v0 }
 0x215   :  { %4308 = vmatprep.subr.bf16.mxu0 %v4687_v0 }
 0x217   :  { %4427 = vmatpush3.bf16.msra.mxu1 %v5236_v32  ;;  %v4342_v32 = vpack.c.bf16 %v1504_v53, %v1497_v36 }
 0x218   :  { %4310 = vmatpush3.bf16.msra.mxu0 %v5266_v17  ;;  %4428 = vmatprep.subr.bf16.mxu1 %v4687_v0 }
 0x219   :  { %4311 = vmatprep.subr.bf16.mxu0 %v4687_v0 }
 0x21b   :  { %4430 = vmatpush3.bf16.msra.mxu1 %v5256_v44  ;;  %v4348_v44 = vpack.c.bf16 %v1532_v11, %v1525_v41 }
 0x21c   :  { %4313 = vmatpush3.bf16.msra.mxu0 %v5270_v21  ;;  %4431 = vmatprep.subr.bf16.mxu1 %v4687_v0 }
 0x21d   :  { %4314 = vmatprep.subr.bf16.mxu0 %v4687_v0 }
 0x21f   :  { %3637 = vmatmul.mubr.f32.vlgmr.msra.gmra.mrb[2].mxu0 %v5315_v3  ;;  %4433 = vmatpush3.bf16.msra.mxu1 %v5258_v16  ;;  %v4351_v16 = vpack.c.bf16 %v1546_v33, %v1539_v58  ;;  %v5616_v58 = vand.u32 4294901760, %v5230_v28 }
 0x220   :  { %4316 = vmatpush3.bf16.msra.mxu0 %v5126_v52  ;;  %4434 = vmatprep.subr.bf16.mxu1 %v4687_v0 }
 0x221   :  { %4317 = vmatprep.subr.bf16.mxu0 %v4687_v0  ;;  %3671 = vmatprep.mubr.msk.f32.mxu0 %vm4688_vm0, %v4689_v1 }
 0x222   :  { %3812 = vmatmul.mubr.f32.vlgmr.msra.gmra.mrb[2].mxu1 %v5384_v29 }
 0x223   :  { %4436 = vmatpush3.bf16.msra.mxu1 %v4291_v31  ;;  %3846 = vmatprep.mubr.msk.f32.mxu1 %vm4688_vm0, %v4689_v1 }
 0x224   :  { %4319 = vmatpush3.bf16.msra.mxu0 %v5143_v55  ;;  %4437 = vmatprep.subr.bf16.mxu1 %v4687_v0 }
 0x225   :  { %4320 = vmatprep.subr.bf16.mxu0 %v4687_v0 }
 0x227   :  { %4439 = vmatpush3.bf16.msra.mxu1 %v4294_v10 }
 0x228   :  { %4322 = vmatpush3.bf16.msra.mxu0 %v5163_v8  ;;  %4440 = vmatprep.subr.bf16.mxu1 %v4687_v0 }
 0x229   :  { %4323 = vmatprep.subr.bf16.mxu0 %v4687_v0 }
 0x22b   :  { %4442 = vmatpush3.bf16.msra.mxu1 %v4297_v45 }
 0x22c   :  { %4325 = vmatpush3.bf16.msra.mxu0 %v5179_v34  ;;  %4443 = vmatprep.subr.bf16.mxu1 %v4687_v0 }
 0x22d   :  { %4326 = vmatprep.subr.bf16.mxu0 %v4687_v0 }
 0x22f   :  { %4445 = vmatpush3.bf16.msra.mxu1 %v4300_v4 }
 0x230   :  { %4328 = vmatpush3.bf16.msra.mxu0 %v5191_v42  ;;  %4446 = vmatprep.subr.bf16.mxu1 %v4687_v0 }
 0x231   :  { %4329 = vmatprep.subr.bf16.mxu0 %v4687_v0 }
 0x233   :  { %4448 = vmatpush3.bf16.msra.mxu1 %v4303_v20 }
 0x234   :  { %4331 = vmatpush3.bf16.msra.mxu0 %v5200_v15  ;;  %4449 = vmatprep.subr.bf16.mxu1 %v4687_v0 }
 0x235   :  { %4332 = vmatprep.subr.bf16.mxu0 %v4687_v0 }
 0x237   :  { %4451 = vmatpush3.bf16.msra.mxu1 %v5262_v63  ;;  %v5615_v63 = vand.u32 4294901760, %v5220_v56  ;;  %v5619_v56 = vand.u32 4294901760, %v5243_v37 }
 0x238   :  { %4334 = vmatpush3.bf16.msra.mxu0 %v5206_v22  ;;  %4452 = vmatprep.subr.bf16.mxu1 %v4687_v0 }
 0x239   :  { %4335 = vmatprep.subr.bf16.mxu0 %v4687_v0 }
 0x23b   :  { %4454 = vmatpush3.bf16.msra.mxu1 %v5266_v17  ;;  %v4354_v17 = vpack.c.bf16 %v5615_v63, %v1553_v26  ;;  %v4360_v26 = vpack.c.bf16 %v5619_v56, %v5618_v25 }
 0x23c   :  { %4337 = vmatpush3.bf16.msra.mxu0 %v5212_v23  ;;  %4455 = vmatprep.subr.bf16.mxu1 %v4687_v0 }
 0x23d   :  { %4338 = vmatprep.subr.bf16.mxu0 %v4687_v0 }
 0x23f   :  { %3672 = vmatmul.mubr.f32.vlgmr.msra.gmra.mrb[2].mxu0 %v1472_v19  ;;  %4457 = vmatpush3.bf16.msra.mxu1 %v5270_v21  ;;  %v5617_v21 = vand.u32 4294901760, %v5232_v59 }
 0x240   :  { %4340 = vmatpush3.bf16.msra.mxu0 %v4339_v60  ;;  %4458 = vmatprep.subr.bf16.mxu1 %v4687_v0 }
 0x241   :  { %4341 = vmatprep.subr.bf16.mxu0 %v4687_v0  ;;  %3706 = vmatprep.mubr.msk.f32.mxu0 %vm4688_vm0, %v4689_v1  ;;  %v4357_v47 = vpack.c.bf16 %v5617_v21, %v5616_v58 }
 0x242   :  { %3847 = vmatmul.mubr.f32.vlgmr.msra.gmra.mrb[2].mxu1 %v5388_v9 }
 0x243   :  { %4460 = vmatpush3.bf16.msra.mxu1 %v5126_v52  ;;  %3881 = vmatprep.mubr.msk.f32.mxu1 %vm4688_vm0, %v4689_v1 }
 0x244   :  { %4343 = vmatpush3.bf16.msra.mxu0 %v4342_v32  ;;  %4461 = vmatprep.subr.bf16.mxu1 %v4687_v0 }
 0x245   :  { %4344 = vmatprep.subr.bf16.mxu0 %v4687_v0 }
 0x247   :  { %4463 = vmatpush3.bf16.msra.mxu1 %v5143_v55 }
 0x248   :  { %4346 = vmatpush3.bf16.msra.mxu0 %v4345_v57  ;;  %4464 = vmatprep.subr.bf16.mxu1 %v4687_v0 }
 0x249   :  { %4347 = vmatprep.subr.bf16.mxu0 %v4687_v0 }
 0x24b   :  { %4466 = vmatpush3.bf16.msra.mxu1 %v5163_v8 }
 0x24c   :  { %4349 = vmatpush3.bf16.msra.mxu0 %v4348_v44  ;;  %4467 = vmatprep.subr.bf16.mxu1 %v4687_v0 }
 0x24d   :  { %4350 = vmatprep.subr.bf16.mxu0 %v4687_v0 }
 0x24f   :  { %4469 = vmatpush3.bf16.msra.mxu1 %v5179_v34 }
 0x250   :  { %4352 = vmatpush3.bf16.msra.mxu0 %v4351_v16  ;;  %4470 = vmatprep.subr.bf16.mxu1 %v4687_v0 }
 0x251   :  { %4353 = vmatprep.subr.bf16.mxu0 %v4687_v0 }
 0x253   :  { %4472 = vmatpush3.bf16.msra.mxu1 %v5191_v42 }
 0x254   :  { %4355 = vmatpush3.bf16.msra.mxu0 %v4354_v17  ;;  %4473 = vmatprep.subr.bf16.mxu1 %v4687_v0 }
 0x255   :  { %4356 = vmatprep.subr.bf16.mxu0 %v4687_v0 }
 0x257   :  { %4475 = vmatpush3.bf16.msra.mxu1 %v5200_v15 }
 0x258   :  { %4358 = vmatpush3.bf16.msra.mxu0 %v4357_v47  ;;  %4476 = vmatprep.subr.bf16.mxu1 %v4687_v0 }
 0x259   :  { %4359 = vmatprep.subr.bf16.mxu0 %v4687_v0 }
 0x25b   :  { %4478 = vmatpush3.bf16.msra.mxu1 %v5206_v22 }
 0x25c   :  { %4361 = vmatpush3.bf16.msra.mxu0 %v4360_v26  ;;  %4479 = vmatprep.subr.bf16.mxu1 %v4687_v0 }
 0x25d   :  { %4362 = vmatprep.subr.bf16.mxu0 %v4687_v0 }
 0x25f   :  { %3707 = vmatmul.mubr.f32.vlgmr.msra.gmra.mrb[2].mxu0 %v5307_v38  ;;  %4481 = vmatpush3.bf16.msra.mxu1 %v5212_v23 }
 0x260   :  { %4364 = vmatpush3.bf16.msra.mxu0 %v5126_v52  ;;  %4482 = vmatprep.subr.bf16.mxu1 %v4687_v0 }
 0x261   :  { %4365 = vmatprep.subr.bf16.mxu0 %v4687_v0  ;;  %3741 = vmatprep.mubr.msk.f32.mxu0 %vm4688_vm0, %v4689_v1 }
 0x262   :  { %3882 = vmatmul.mubr.f32.vlgmr.msra.gmra.mrb[2].mxu1 %v2113_v30 }
 0x263   :  { %4484 = vmatpush3.bf16.msra.mxu1 %v4339_v60  ;;  %3916 = vmatprep.mubr.msk.f32.mxu1 %vm4688_vm0, %v4689_v1 }
 0x264   :  { %4367 = vmatpush3.bf16.msra.mxu0 %v5143_v55  ;;  %4485 = vmatprep.subr.bf16.mxu1 %v4687_v0 }
 0x265   :  { %4368 = vmatprep.subr.bf16.mxu0 %v4687_v0 }
 0x267   :  { %4487 = vmatpush3.bf16.msra.mxu1 %v4342_v32 }
 0x268   :  { %4370 = vmatpush3.bf16.msra.mxu0 %v5163_v8  ;;  %4488 = vmatprep.subr.bf16.mxu1 %v4687_v0 }
 0x269   :  { %4371 = vmatprep.subr.bf16.mxu0 %v4687_v0 }
 0x26b   :  { %4490 = vmatpush3.bf16.msra.mxu1 %v4345_v57 }
 0x26c   :  { %4373 = vmatpush3.bf16.msra.mxu0 %v5179_v34  ;;  %4491 = vmatprep.subr.bf16.mxu1 %v4687_v0 }
 0x26d   :  { %4374 = vmatprep.subr.bf16.mxu0 %v4687_v0 }
 0x26f   :  { %4493 = vmatpush3.bf16.msra.mxu1 %v4348_v44 }
 0x270   :  { %4376 = vmatpush3.bf16.msra.mxu0 %v5191_v42  ;;  %4494 = vmatprep.subr.bf16.mxu1 %v4687_v0 }
 0x271   :  { %4377 = vmatprep.subr.bf16.mxu0 %v4687_v0 }
 0x273   :  { %4496 = vmatpush3.bf16.msra.mxu1 %v4351_v16 }
 0x274   :  { %4379 = vmatpush3.bf16.msra.mxu0 %v5200_v15  ;;  %4497 = vmatprep.subr.bf16.mxu1 %v4687_v0 }
 0x275   :  { %4380 = vmatprep.subr.bf16.mxu0 %v4687_v0 }
 0x277   :  { %4499 = vmatpush3.bf16.msra.mxu1 %v4354_v17 }
 0x278   :  { %4382 = vmatpush3.bf16.msra.mxu0 %v5206_v22  ;;  %4500 = vmatprep.subr.bf16.mxu1 %v4687_v0 }
 0x279   :  { %4383 = vmatprep.subr.bf16.mxu0 %v4687_v0 }
 0x27b   :  { %4502 = vmatpush3.bf16.msra.mxu1 %v4357_v47 }
 0x27c   :  { %4385 = vmatpush3.bf16.msra.mxu0 %v5212_v23  ;;  %4503 = vmatprep.subr.bf16.mxu1 %v4687_v0 }
 0x27f   :  { %3742 = vmatmul.mubr.f32.vlgmr.msra.gmra.mrb[2].mxu0 %v5307_v38  ;;  %4505 = vmatpush3.bf16.msra.mxu1 %v4360_v26 }
 0x280   :  { %4506 = vmatprep.subr.bf16.mxu1 %v4687_v0 }
 0x282   :  { %3917 = vmatmul.mubr.f32.vlgmr.msra.gmra.mrb[2].mxu1 %v5384_v29 }
 0x283   :  { %4508 = vmatpush3.bf16.msra.mxu1 %v5126_v52  ;;  %3951 = vmatprep.mubr.msk.f32.mxu1 %vm4688_vm0, %v4689_v1 }
 0x284   :  { %4509 = vmatprep.subr.bf16.mxu1 %v4687_v0 }
 0x287   :  { %4511 = vmatpush3.bf16.msra.mxu1 %v5143_v55  ;;  %v4585_v55 = vld [vmem:[#allocation2] sm:$0xff] }
 0x288   :  { %4512 = vmatprep.subr.bf16.mxu1 %v4687_v0 }
 0x28b   :  { %4514 = vmatpush3.bf16.msra.mxu1 %v5163_v8 }
 0x28c   :  { %4515 = vmatprep.subr.bf16.mxu1 %v4687_v0 }
 0x28f   :  { %4517 = vmatpush3.bf16.msra.mxu1 %v5179_v34 }
 0x290   :  { %4518 = vmatprep.subr.bf16.mxu1 %v4687_v0 }
 0x293   :  { %4520 = vmatpush3.bf16.msra.mxu1 %v5191_v42  ;;  %v2704_v42 = vld [vmem:[%s5602_s1] ss:$0 sm:$0xff] }
 0x294   :  { %4521 = vmatprep.subr.bf16.mxu1 %v4687_v0 }
 0x297   :  { %4523 = vmatpush3.bf16.msra.mxu1 %v5200_v15 }
 0x298   :  { %4524 = vmatprep.subr.bf16.mxu1 %v4687_v0 }
 0x29b   :  { %4526 = vmatpush3.bf16.msra.mxu1 %v5206_v22  ;;  %v2705_v22 = vld [vmem:[%s5602_s1 + $0x1] ss:$0 sm:$0xff] }
 0x29c   :  { %4527 = vmatprep.subr.bf16.mxu1 %v4687_v0 }
 0x29f   :  { %4529 = vmatpush3.bf16.msra.mxu1 %v5212_v23 }
 0x2a2   :  { %3952 = vmatmul.mubr.f32.vlgmr.msra.gmra.mrb[2].mxu1 %v5384_v29 }
 0x352   :  { %v2026_v1 = vpop.f32.mrb[2].mxu0 }
 0x353   :  { %v3743_v52 = vpop.f32.mrb[3].mxu0  ;;  %v2673_v8 = vsub.f32 %v4585_v55, %v2026_v1 }
 0x375   :  { %v2667_v34 = vpop.f32.mrb[2].mxu1 }
 0x376   :  { %v2674_v15 = vmul.f32 %v2673_v8, %v2667_v34  ;;  %v3953_v28 = vpop.f32.mrb[3].mxu1 }
 0x378   :  { %v2679_v0 = vmul.f32 %v2704_v42, %v2674_v15 }
 0x37a   :  { %v2684_v59 = vadd.f32 %v2705_v22, %v2679_v0 }
 0x37c   :  { %2685 = vst [vmem:[#allocation8] sm:$0xff] %v2684_v59 }
 0x37d   :  { %2690 = vsyncadd [#allocation4], 64  ;;  %s4690_s5 = smov [#allocation8]  }
 0x37e   :  { %s2691_s6 = sshll.u32 %s4690_s5, 4  ;;  %s2692_s6 = int_to_ptr.vmem [resolvable:$true] %s2691_s6 }
 0x37f   :  { %s4652_s7 = scalar_lea.vmem %s2692_s6, 64  ;;  %s4656_s8 = scalar_lea.vmem %s2692_s6, 128 }
 0x380   :  { %p4653_p10 = scmp.ne.s32.totalorder %s2692_s6, %s4652_s7  ;;  %p4657_p11 = scmp.lt.s32.totalorder %s2692_s6, %s2692_s6 }
 0x381   :  { %p4658_p12 = scmp.lt.s32.totalorder %s4656_s8, %s4652_s7 }
 0x383   :  { %p4659_p13 = por %p4658_p12, %p4657_p11 }
 0x385   :  { %p4660_p0 = pnand %p4659_p13, %p4653_p10 }
 0x387   :  { %4663 = shalt.err (!%p4660_p0)
}
 0x388   :  { %s4664_s11 = scalar_lea.hbm %s5605_s4, 64 }
 0x389   :  { %p4665_p1 = scmp.ne.s32.totalorder %s5605_s4, %s4664_s11  ;;  %p4668_p2 = scmp.lt.u32.totalorder %s4664_s11, %s5605_s4 }
 0x38b   :  { %p4670_p3 = pnand %p4668_p2, %p4665_p1 }
 0x38d   :  { %4673 = shalt.err (!%p4670_p3)
}
 0x38e   :  { %2697 = dma.vmem_to_hbm [thread:$0]  %s2692_s6, 64, %s5605_s4, [#allocation4], %s4684_s13, %s4684_s13, %s4685_s14  }
 0x38f   :  { %4678 = dma.done.wait [#allocation4], 128  }
 0x390   :  { %4679 = vsyncadd [#allocation4], 4294967168 }
 0x391   :  { %2701 = vsyncpa [#allocation3], 1 }
 0x392   :  { %2702 = vsyncpa [#allocation6], 1 }
 0x393   :  { %2703 = vsyncpa [#allocation4], 1 }

</bundles_post_ra>
